<compile_context>
chip_gen: v6e
topology: v6e:2x2x1
jax: 0.10.0
libtpu: 0.0.40
codegen_flags: <defaults>
</compile_context>

<pallas_src>
import functools

import jax
import jax.numpy as jnp
from jax import lax
from jax.experimental import pallas as pl
from jax.experimental.pallas import tpu as pltpu

LANES = 128
MAX_TILE_ROWS = 2048   # 1 MiB per f32 input tile -> 4 MiB double-buffered IO
MAX_SHARDS = 2         # v7x has 2 TensorCores; extra axis is free elsewhere


def _cdiv(a, b):
    return (a + b - 1) // b


def _round_up(a, b):
    return _cdiv(a, b) * b


def _charbonnier_kernel(x_ref, y_ref, out_ref, *, eps, rows, tile_rows,
                        tiles_per_shard):
    s = pl.program_id(0)   # shard ("parallel")
    i = pl.program_id(1)   # row-tile within shard ("arbitrary", reduction)

    @pl.when(i == 0)
    def _():
        out_ref[...] = jnp.zeros_like(out_ref)

    # Logical (unclamped) tile index -> global row offset for masking.
    start_row = (s * tiles_per_shard + i) * tile_rows

    x = x_ref[...].astype(jnp.float32)
    y = y_ref[...].astype(jnp.float32)
    d = x - y
    v = jnp.sqrt(d * d + jnp.float32(eps) * jnp.float32(eps))

    # Mask rows beyond the real extent (partial last tile, clamped extra
    # tiles, or a block taller than the array).
    row = lax.broadcasted_iota(jnp.int32, v.shape, 0) + start_row
    v = jnp.where(row < rows, v, 0.0)

    # Reduce only along the leading axis (VPU adds of (8, 128) slabs); the
    # cross-lane reduction is deferred to the wrapper epilogue.
    partial = v.reshape(tile_rows // 8, 8, LANES).sum(axis=0)
    out_ref[...] += partial[None, :, :]


def charbonnier_loss(x, y, eps=1e-3):
    assert x.shape == y.shape
    n_real = x.size
    xf = jnp.ravel(x)
    yf = jnp.ravel(y)

    eps_f = jnp.float32(eps)

    n_main = (n_real // LANES) * LANES
    rows = n_main // LANES

    # Tail (< 128 elements): plain JAX, negligible cost, avoids any padding copy.
    if n_main < n_real:
        xt = xf[n_main:].astype(jnp.float32)
        yt = yf[n_main:].astype(jnp.float32)
        dt = xt - yt
        tail_sum = jnp.sum(jnp.sqrt(dt * dt + eps_f * eps_f))
    else:
        tail_sum = jnp.float32(0.0)

    if rows == 0:
        return tail_sum / jnp.float32(n_real)

    # Lane-dense view of the 128-divisible prefix (no data movement).
    x2d = xf[:n_main].reshape(rows, LANES)
    y2d = yf[:n_main].reshape(rows, LANES)

    tile_rows = min(MAX_TILE_ROWS, _round_up(rows, 32))
    num_tiles = _cdiv(rows, tile_rows)
    num_shards = min(MAX_SHARDS, num_tiles)
    tiles_per_shard = _cdiv(num_tiles, num_shards)

    def in_index_map(s, i):
        # Clamp so the (rare) extra tile of an uneven shard split never maps
        # out of range; its rows are fully masked in-kernel anyway.
        t = jnp.minimum(s * tiles_per_shard + i, num_tiles - 1)
        return (t, 0)

    kernel = functools.partial(
        _charbonnier_kernel,
        eps=eps,
        rows=rows,
        tile_rows=tile_rows,
        tiles_per_shard=tiles_per_shard,
    )

    partials = pl.pallas_call(
        kernel,
        out_shape=jax.ShapeDtypeStruct((num_shards, 8, LANES), jnp.float32),
        grid_spec=pltpu.PrefetchScalarGridSpec(
            num_scalar_prefetch=0,
            grid=(num_shards, tiles_per_shard),
            in_specs=[
                pl.BlockSpec((tile_rows, LANES), in_index_map),
                pl.BlockSpec((tile_rows, LANES), in_index_map),
            ],
            out_specs=pl.BlockSpec((1, 8, LANES), lambda s, i: (s, 0, 0)),
        ),
        compiler_params=pltpu.CompilerParams(
            dimension_semantics=("parallel", "arbitrary"),
        ),
    )(x2d, y2d)

    total = jnp.sum(partials) + tail_sum
    return total / jnp.float32(n_real)


if __name__ == "__main__":
    key = jax.random.PRNGKey(0)
    kx, ky = jax.random.split(key)

    # NCHW, matching the PyTorch module's typical use.
    shape = (2, 4, 16, 16)
    x = jax.random.normal(kx, shape, dtype=jnp.float32)
    y = jax.random.normal(ky, shape, dtype=jnp.float32)

    loss = charbonnier_loss(x, y, eps=1e-3)
    jax.block_until_ready(loss)

    diff = x - y
    ref = jnp.mean(jnp.sqrt(diff * diff + jnp.float32(1e-3) * jnp.float32(1e-3)))
    assert jnp.allclose(loss, ref, rtol=1e-5, atol=1e-5), (loss, ref)

    # Ragged case: exercises the in-kernel row mask and the <128-element tail.
    shape2 = (3, 5, 7, 11)
    x2 = jax.random.normal(kx, shape2, dtype=jnp.float32)
    y2 = jax.random.normal(ky, shape2, dtype=jnp.float32)
    loss2 = charbonnier_loss(x2, y2, eps=1e-3)
    jax.block_until_ready(loss2)

    d2 = x2 - y2
    ref2 = jnp.mean(jnp.sqrt(d2 * d2 + jnp.float32(1e-3) * jnp.float32(1e-3)))
    assert jnp.allclose(loss2, ref2, rtol=1e-5, atol=1e-5), (loss2, ref2)

    print("KERNEL_OK")
</pallas_src>

<mosaic_0001>
module attributes {stable_mosaic.version = 11 : i64} {
  func.func @_charbonnier_kernel(%arg0: i32, %arg1: i32, %arg2: memref<32x128xf32, #tpu.memory_space<vmem>>, %arg3: memref<32x128xf32, #tpu.memory_space<vmem>>, %arg4: memref<1x8x128xf32, #tpu.memory_space<vmem>>) attributes {dimension_semantics = [#tpu.dimension_semantics<parallel>, #tpu.dimension_semantics<arbitrary>], iteration_bounds = array<i64: 1, 1>, scalar_prefetch = 0 : i64, scratch_operands = 0 : i64, tpu.core_type = #tpu.core_type<tc>, window_params = [{transform_indices = @transform_0, window_bounds = array<i64: 32, 128>}, {transform_indices = @transform_1, window_bounds = array<i64: 32, 128>}, {transform_indices = @transform_2, window_bounds = array<i64: 1, 8, 128>}]} {
    %c0_i32 = arith.constant 0 : i32
    %0 = arith.cmpi eq, %arg1, %c0_i32 : i32
    %1 = arith.extui %0 : i1 to i32
    %c0_i32_0 = arith.constant 0 : i32
    %2 = arith.cmpi ne, %1, %c0_i32_0 : i32
    scf.if %2 {
      %cst_13 = arith.constant 0.000000e+00 : f32
      %27 = vector.broadcast %cst_13 : f32 to vector<1x8x128xf32>
      %c0_14 = arith.constant 0 : index
      %c0_15 = arith.constant 0 : index
      %c0_16 = arith.constant 0 : index
      %28 = vector.load %arg4[%c0_14, %c0_15, %c0_16] : memref<1x8x128xf32, #tpu.memory_space<vmem>>, vector<1x8x128xf32>
      tpu.vector_store %arg4[%c0_14, %c0_15, %c0_16], %27 {strides = array<i32>} : memref<1x8x128xf32, #tpu.memory_space<vmem>>, vector<1x8x128xf32>,
    } else {
    }
    %c1_i32 = arith.constant 1 : i32
    %3 = arith.muli %arg0, %c1_i32 : i32
    %4 = arith.addi %3, %arg1 : i32
    %c32_i32 = arith.constant 32 : i32
    %5 = arith.muli %4, %c32_i32 : i32
    %c0 = arith.constant 0 : index
    %c0_1 = arith.constant 0 : index
    %6 = vector.load %arg2[%c0, %c0_1] : memref<32x128xf32, #tpu.memory_space<vmem>>, vector<32x128xf32>
    %c0_2 = arith.constant 0 : index
    %c0_3 = arith.constant 0 : index
    %7 = vector.load %arg3[%c0_2, %c0_3] : memref<32x128xf32, #tpu.memory_space<vmem>>, vector<32x128xf32>
    %8 = arith.subf %6, %7 : vector<32x128xf32>
    %9 = arith.mulf %8, %8 : vector<32x128xf32>
    %cst = arith.constant 1.000000e-03 : f32
    %cst_4 = arith.constant 1.000000e-03 : f32
    %10 = arith.mulf %cst, %cst_4 : f32
    %11 = vector.broadcast %10 : f32 to vector<32x128xf32>
    %12 = arith.addf %9, %11 : vector<32x128xf32>
    %13 = math.sqrt %12 : vector<32x128xf32>
    %14 = tpu.iota {dimensions = array<i32: 0>} : vector<32x128xi32>
    %15 = vector.broadcast %5 : i32 to vector<32x128xi32>
    %16 = arith.addi %14, %15 : vector<32x128xi32>
    %c16_i32 = arith.constant 16 : i32
    %17 = vector.broadcast %c16_i32 : i32 to vector<32x128xi32>
    %18 = arith.cmpi slt, %16, %17 : vector<32x128xi32>
    %cst_5 = arith.constant 0.000000e+00 : f32
    %19 = vector.broadcast %cst_5 : f32 to vector<32x128xf32>
    %20 = arith.select %18, %13, %19 : vector<32x128xi1>, vector<32x128xf32>
    %21 = vector.shape_cast %20 : vector<32x128xf32> to vector<4x8x128xf32>
    %cst_6 = arith.constant dense<0.000000e+00> : vector<8x128xf32>
    %22 = vector.multi_reduction <add>, %21, %cst_6 [0] : vector<4x8x128xf32> to vector<8x128xf32>
    %c0_7 = arith.constant 0 : index
    %c0_8 = arith.constant 0 : index
    %c0_9 = arith.constant 0 : index
    %23 = vector.load %arg4[%c0_7, %c0_8, %c0_9] : memref<1x8x128xf32, #tpu.memory_space<vmem>>, vector<1x8x128xf32>
    %24 = vector.shape_cast %22 : vector<8x128xf32> to vector<1x8x128xf32>
    %25 = arith.addf %23, %24 : vector<1x8x128xf32>
    %c0_10 = arith.constant 0 : index
    %c0_11 = arith.constant 0 : index
    %c0_12 = arith.constant 0 : index
    %26 = vector.load %arg4[%c0_10, %c0_11, %c0_12] : memref<1x8x128xf32, #tpu.memory_space<vmem>>, vector<1x8x128xf32>
    tpu.vector_store %arg4[%c0_10, %c0_11, %c0_12], %25 {strides = array<i32>} : memref<1x8x128xf32, #tpu.memory_space<vmem>>, vector<1x8x128xf32>,
    return
  }
  func.func @transform_0(%arg0: i32, %arg1: i32) -> (i32, i32) {
    %c1_i32 = arith.constant 1 : i32
    %0 = arith.muli %arg0, %c1_i32 : i32
    %1 = arith.addi %0, %arg1 : i32
    %c0_i32 = arith.constant 0 : i32
    %2 = arith.minsi %1, %c0_i32 : i32
    %c0_i32_0 = arith.constant 0 : i32
    %c0_i32_1 = arith.constant 0 : i32
    return %2, %c0_i32_0 : i32, i32
  }
  func.func @transform_1(%arg0: i32, %arg1: i32) -> (i32, i32) {
    %c1_i32 = arith.constant 1 : i32
    %0 = arith.muli %arg0, %c1_i32 : i32
    %1 = arith.addi %0, %arg1 : i32
    %c0_i32 = arith.constant 0 : i32
    %2 = arith.minsi %1, %c0_i32 : i32
    %c0_i32_0 = arith.constant 0 : i32
    %c0_i32_1 = arith.constant 0 : i32
    return %2, %c0_i32_0 : i32, i32
  }
  func.func @transform_2(%arg0: i32, %arg1: i32) -> (i32, i32, i32) {
    %c0_i32 = arith.constant 0 : i32
    %c0_i32_0 = arith.constant 0 : i32
    %c0_i32_1 = arith.constant 0 : i32
    return %arg0, %c0_i32, %c0_i32_0 : i32, i32, i32
  }
}

</mosaic_0001>

<bundles_post_ra>
// kernel: tpu_custom_call.1
= control target key start
LH: loop header
LB: loop body
LE: loop exit
PB: predicated region body
PF: predicated region fallthrough
CT: control target
= control target key end

     0   :  { %7 = vsyncpa [#allocation3], 0  ;;  %s276_s0 = inlined_call_operand.hbm [shape: f32[16,128], index: 0, kind: input, shape index: {}]   ;;  %s277_s1 = inlined_call_operand.hbm [shape: f32[16,128], index: 1, kind: input, shape index: {}]   ;;  %s278_s2 = inlined_call_operand.hbm [shape: f32[1,8,128], index: 2, kind: output, shape index: {}]  }
   0x1   :  { %8 = vsyncpa [#allocation6], 0 }
   0x2   :  { %9 = vsyncpa [#allocation4], 0 }
   0x3   :  { %20 = vsyncadd [#allocation3], 256  ;;  %s247_s9 = smov [#allocation2]  }
   0x4   :  { %s25_s10 = sshll.u32 %s247_s9, 4  ;;  %s26_s10 = int_to_ptr.vmem [resolvable:$true] %s25_s10 }
   0x5   :  { %s189_s11 = scalar_lea.vmem %s26_s10, 256  ;;  %s193_s12 = scalar_lea.vmem %s26_s10, 512 }
   0x6   :  { %p190_p0 = scmp.ne.s32.totalorder %s26_s10, %s189_s11  ;;  %p194_p1 = scmp.lt.s32.totalorder %s26_s10, %s26_s10 }
   0x7   :  { %p195_p2 = scmp.lt.s32.totalorder %s193_s12, %s189_s11 }
   0x9   :  { %p196_p3 = por %p195_p2, %p194_p1 }
   0xb   :  { %p197_p4 = pnand %p196_p3, %p190_p0 }
   0xd   :  { %200 = shalt.err (!%p197_p4)
}
   0xe   :  { %s248_s13 = smov 128   ;;  %s249_s14 = smov 8  }
   0xf   :  { %31 = dma.hbm_to_vmem [thread:$0]  %s276_s0, 256, %s26_s10, [#allocation3], %s248_s13, %s248_s13, %s249_s14  }
  0x10   :  { %42 = vsyncadd [#allocation6], 256  ;;  %s250_s17 = smov [#allocation5]  }
  0x11   :  { %s47_s18 = sshll.u32 %s250_s17, 4  ;;  %s48_s18 = int_to_ptr.vmem [resolvable:$true] %s47_s18 }
  0x12   :  { %s209_s19 = scalar_lea.vmem %s48_s18, 256  ;;  %s213_s20 = scalar_lea.vmem %s48_s18, 512 }
  0x13   :  { %p210_p5 = scmp.ne.s32.totalorder %s48_s18, %s209_s19  ;;  %p214_p6 = scmp.lt.s32.totalorder %s48_s18, %s48_s18 }
  0x14   :  { %p215_p7 = scmp.lt.s32.totalorder %s213_s20, %s209_s19 }
  0x16   :  { %p216_p8 = por %p215_p7, %p214_p6 }
  0x18   :  { %p217_p9 = pnand %p216_p8, %p210_p5 }
  0x1a   :  { %220 = shalt.err (!%p217_p9)
}
  0x1b   :  { %53 = dma.hbm_to_vmem [thread:$0]  %s277_s1, 256, %s48_s18, [#allocation6], %s248_s13, %s248_s13, %s249_s14  }
  0x1c   :  { %241 = dma.done.wait [#allocation3], 512  }
  0x1d   :  { %242 = vsyncadd [#allocation3], 4294966784 }
  0x1e   :  { %243 = dma.done.wait [#allocation6], 512  }
  0x1f   :  { %244 = vsyncadd [#allocation6], 4294966784  ;;  %v79_v0 = vld [vmem:[#allocation2] sm:$0xff]  ;;  %v80_v1 = vld [vmem:[#allocation2 + $0x8] sm:$0xff]  ;;  %s251_s0 = smov [#allocation7]  }
  0x20   :  { %v83_v2 = vld [vmem:[#allocation5] sm:$0xff]  ;;  %v84_v3 = vld [vmem:[#allocation5 + $0x8] sm:$0xff]  ;;  %s157_s1 = sshll.u32 %s251_s0, 4  ;;  %s158_s1 = int_to_ptr.vmem [resolvable:$true] %s157_s1 }
  0x21   :  { %v87_v4 = vsub.f32 %v79_v0, %v83_v2  ;;  %v88_v5 = vsub.f32 %v80_v1, %v84_v3  ;;  %s221_s23 = scalar_lea.vmem %s158_s1, 128  ;;  %p226_p11 = scmp.lt.s32.totalorder %s158_s1, %s158_s1 }
  0x22   :  { %p222_p10 = scmp.ne.s32.totalorder %s158_s1, %s221_s23  ;;  %p227_p12 = scmp.lt.s32.totalorder %s221_s23, %s221_s23 }
  0x23   :  { %v91_v6 = vmul.f32 %v87_v4, %v87_v4  ;;  %v92_v7 = vmul.f32 %v88_v5, %v88_v5 }
  0x24   :  { %p228_p13 = por %p227_p12, %p226_p11 }
  0x25   :  { %v95_v8 = vadd.f32 1.0000001e-06, %v91_v6  ;;  %v96_v9 = vadd.f32 1.0000001e-06, %v92_v7 }
  0x26   :  { %p229_p0 = pnand %p228_p13, %p222_p10 }
  0x27   :  { %177 = vrsqrt.f32 %v95_v8  ;;  %vm101_vm0 = vcmp.eq.f32.partialorder %v95_v8, inf  ;;  %v104_v11 = vand.u32 2147483648, %v95_v8  ;;  %vm103_vm1 = vcmp.eq.f32.partialorder %v95_v8, 0.0 }
  0x28   :  { %179 = vrsqrt.f32 %v96_v9  ;;  %vm108_vm2 = vcmp.eq.f32.partialorder %v96_v9, inf  ;;  %v111_v14 = vand.u32 2147483648, %v96_v9  ;;  %vm110_vm3 = vcmp.eq.f32.partialorder %v96_v9, 0.0 }
  0x34   :  { %v178_v10 = vpop.eup %177 }
  0x35   :  { %v180_v12 = vpop.eup %179  ;;  %v100_v13 = vmul.f32 %v178_v10, %v95_v8 }
  0x36   :  { %v107_v15 = vmul.f32 %v180_v12, %v96_v9 }
  0x37   :  { %v102_v16 = vsel %vm101_vm0, %v95_v8, %v100_v13 }
  0x38   :  { %v105_v17 = vsel %vm103_vm1, %v104_v11, %v102_v16  ;;  %v109_v18 = vsel %vm108_vm2, %v96_v9, %v107_v15 }
  0x39   :  { %v112_v19 = vsel %vm110_vm3, %v111_v14, %v109_v18 }
  0x3a   :  { %v145_v20 = vadd.f32 %v112_v19, %v105_v17 }
  0x3c   :  { %150 = vst [vmem:[#allocation7] sm:$0xff] %v145_v20 }
  0x3d   :  { %232 = shalt.err (!%p229_p0)
}
  0x3e   :  { %160 = dma.vmem_to_hbm [thread:$0]  %s158_s1, 128, %s278_s2, [#allocation4]  }
  0x3f   :  { %245 = dma.done.wait [#allocation4], 128  }
  0x40   :  { %246 = vsyncadd [#allocation4], 4294967168 }
  0x41   :  { %164 = vsyncpa [#allocation3], 1 }
  0x42   :  { %165 = vsyncpa [#allocation6], 1 }
  0x43   :  { %166 = vsyncpa [#allocation4], 1 }

</bundles_post_ra>
